<compile_context>
chip_gen: v5e
topology: v5e:2x2
jax: 0.10.0
libtpu: 0.0.40
codegen_flags: <defaults>
</compile_context>

<pallas_src>
import functools

import jax
import jax.numpy as jnp
from jax.experimental import pallas as pl
from jax.experimental.pallas import tpu as pltpu

BN_EPS = 1e-5
LANE = 128
_TILE_CAP = 8192                 # review: 4K-32K range; 8K keeps per-tile VMEM modest on v7x
_VMEM_TILE_BUDGET = 20 * 2**20   # target working-set per tile (conservative across v5e/v6e/v7x)


def _round_up(x, m):
    return -(-x // m) * m


def qednet_kernel(n_hidden, *refs):
    """Fused forward pass; activations kept as (features, batch) = (sublanes, lanes).

    refs (n_hidden > 0):
      x_ref  : (TILE_B, d0) f32     native-layout input tile (BN folded into w1/b1)
      w1_ref : (d1, d0)   bf16      first Linear weight (BN-folded), PyTorch (out, in) layout
      b1_ref : (d1, 1)    f32
      wh_ref : (n_hidden, dh, dh) bf16   stacked hidden Linear weights
      bh_ref : (n_hidden, dh, 1)  f32    stacked hidden Linear biases
      wl_ref : (dh, out_dim) f32    last Linear weight, pre-transposed
      bl_ref : (out_dim, 1)  f32
      out_ref: (out_dim, TILE_B) f32
    """
    if n_hidden > 0:
        x_ref, w1_ref, b1_ref, wh_ref, bh_ref, wl_ref, bl_ref, out_ref = refs
    else:
        x_ref, w1_ref, b1_ref, wl_ref, bl_ref, out_ref = refs
        wh_ref = bh_ref = None

    # First (BN-folded) Linear: contract the feature axis of both operands (W1 @ x.T),
    # the same MXU pattern as Q @ K^T.  bf16 operands, f32 accumulation.
    x = x_ref[...].astype(jnp.bfloat16)                      # (TILE_B, d0)
    h = jax.lax.dot_general(
        w1_ref[...], x, (((1,), (1,)), ((), ())),
        preferred_element_type=jnp.float32)                  # (d1, TILE_B), lane-dense batch
    h = jnp.maximum(h + b1_ref[...], 0.0)

    # Hidden Linear+ReLU layers (n_hidden is small & static -> unrolled).
    # bf16 MXU operands, f32 accumulation; bias/ReLU in f32.
    # TODO(synk): if bundle dumps still show the MXU-push slot saturated, try a VPU
    # (broadcast mul+add) formulation of these 32-wide layers (review item 3, measure first).
    for i in range(n_hidden):
        h = jnp.dot(wh_ref[i], h.astype(jnp.bfloat16),
                    preferred_element_type=jnp.float32)
        h = jnp.maximum(h + bh_ref[i], 0.0)

    # Last Linear + Sigmoid.
    wl = wl_ref[...]                                         # (dh, out_dim) f32
    out_dim = wl.shape[1]
    if out_dim == 1:
        # 1-wide output: lane-dense VPU multiply + sublane (XLU) reduce instead of an
        # MXU pass whose result tile would have a single valid column.
        logits = jnp.sum(wl * h, axis=0, keepdims=True) + bl_ref[...]
    else:
        # General fallback: contract feature axis 0 of both operands -> (out_dim, TILE_B).
        logits = jax.lax.dot_general(
            wl, h, (((0,), (0,)), ((), ())),
            preferred_element_type=jnp.float32) + bl_ref[...]
    out_ref[...] = jax.nn.sigmoid(logits)


def init_params(key, dims):
    """Deterministic init mirroring PyTorch defaults (U(-1/sqrt(fan_in), 1/sqrt(fan_in))).

    Weights are stored in PyTorch layout (out_dim, in_dim); biases as (out_dim,) vectors.
    Note: for len(dims) == 2 this builds two Linears (encoder.first and last), exactly like
    the PyTorch module does; that degenerate config only runs if dims[0] == dims[1].
    """
    d0 = dims[0]
    bn = dict(
        gamma=jnp.ones((d0,), jnp.float32),
        beta=jnp.zeros((d0,), jnp.float32),
        mean=jnp.zeros((d0,), jnp.float32),
        var=jnp.ones((d0,), jnp.float32),
    )

    pairs = list(zip(dims[:-1], dims[1:]))
    # layers: first, hidden (Linear(in, in) for middle pairs), last
    layer_dims = [pairs[0]] + [(din, din) for (din, _dout) in pairs[1:-1]] + [pairs[-1]]

    layers = []
    for (din, dout) in layer_dims:
        key, kw, kb = jax.random.split(key, 3)
        bound = 1.0 / jnp.sqrt(float(din))
        w = jax.random.uniform(kw, (dout, din), jnp.float32, -bound, bound)
        b = jax.random.uniform(kb, (dout,), jnp.float32, -bound, bound)
        layers.append((w, b))
    return dict(bn=bn, layers=layers)


def qednet_forward(x, params, tile_b=None):
    """Fused QedNet forward. Returns the flattened output, matching x.flatten() in PyTorch."""
    bn = params["bn"]
    layers = params["layers"]
    n_hidden = len(layers) - 2
    assert n_hidden >= 0

    B, d0 = x.shape
    x = x.astype(jnp.float32)

    # --- Fold BatchNorm1d (eval mode) into the first Linear (trace-time constant fold) ---
    inv_std = jax.lax.rsqrt(bn["var"] + BN_EPS)          # (d0,)
    s = bn["gamma"] * inv_std                            # (d0,)
    t = bn["beta"] - bn["mean"] * s                      # (d0,)
    W1, b1 = layers[0]                                   # (d1, d0), (d1,)
    w1_eff = (W1 * s[None, :]).astype(jnp.bfloat16)      # (d1, d0) bf16 MXU operand
    b1_eff = (b1 + W1 @ t)[:, None]                      # (d1, 1) f32
    d1 = W1.shape[0]

    # --- Pack hidden layers into stacked arrays (fewer DMAs); weights bf16, biases f32 ---
    if n_hidden > 0:
        wh = jnp.stack([w for (w, _) in layers[1:-1]]).astype(jnp.bfloat16)  # (n_hidden, dh, dh)
        bh = jnp.stack([b[:, None] for (_, b) in layers[1:-1]])              # (n_hidden, dh, 1)
        dh = wh.shape[1]
    else:
        wh = bh = None
        dh = d1

    Wl, bl = layers[-1]                                  # (out_dim, dh), (out_dim,)
    out_dim = Wl.shape[0]
    wl_t = Wl.T.astype(jnp.float32)                      # (dh, out_dim), f32 (VPU/XLU path)
    bl_c = bl[:, None]                                   # (out_dim, 1)

    # --- Tile selection: big lane-multiple batch tiles, capped by a per-tile VMEM budget ---
    dmax = max(d1, dh)
    col_bytes = (2 * _round_up(d0, LANE) * 4             # double-buffered (tile_b, d0) f32 input
                 + 10 * dmax * 4                         # live (dmax, tile_b) f32/bf16 temps
                 + 2 * _round_up(out_dim, 8) * 4)        # double-buffered (out_dim, tile_b) output
    if tile_b is None:
        if B < LANE:
            tile_b = B                                   # single ragged tile (full-dim block)
        else:
            tile_b = min(_TILE_CAP, _round_up(B, LANE))
            while tile_b > LANE and tile_b * col_bytes > _VMEM_TILE_BUDGET:
                tile_b = _round_up(tile_b // 2, LANE)
    assert tile_b == B or tile_b % LANE == 0, "tile_b must be a multiple of 128 (or equal B)"

    vmem_limit = int(min(48 * 2**20, max(1.6 * tile_b * col_bytes + 2**20, 16 * 2**20)))

    grid = (pl.cdiv(B, tile_b),)

    in_specs = [
        pl.BlockSpec((tile_b, d0), lambda i: (i, 0)),    # native layout: no wrapper x.T / pad
        pl.BlockSpec(w1_eff.shape, lambda i: (0, 0)),
        pl.BlockSpec(b1_eff.shape, lambda i: (0, 0)),
    ]
    args = [x, w1_eff, b1_eff]
    if n_hidden > 0:
        in_specs += [pl.BlockSpec(wh.shape, lambda i: (0, 0, 0)),
                     pl.BlockSpec(bh.shape, lambda i: (0, 0, 0))]
        args += [wh, bh]
    in_specs += [pl.BlockSpec(wl_t.shape, lambda i: (0, 0)),
                 pl.BlockSpec(bl_c.shape, lambda i: (0, 0))]
    args += [wl_t, bl_c]

    out_specs = pl.BlockSpec((out_dim, tile_b), lambda i: (0, i))

    out = pl.pallas_call(
        functools.partial(qednet_kernel, n_hidden),
        out_shape=jax.ShapeDtypeStruct((out_dim, B), jnp.float32),
        grid=grid,
        in_specs=in_specs,
        out_specs=out_specs,
        compiler_params=pltpu.CompilerParams(
            dimension_semantics=("parallel",),
            vmem_limit_bytes=vmem_limit),
    )(*args)

    # (out_dim, B) -> flatten order of the PyTorch (B, out_dim) output.
    if out_dim == 1:
        return out.reshape(-1)
    return out.T.reshape(-1)


def ref_forward(x, params):
    """Pure-JAX f32 reference (standard layout, unfused BN) for correctness checking."""
    bn = params["bn"]
    h = (x - bn["mean"]) / jnp.sqrt(bn["var"] + BN_EPS) * bn["gamma"] + bn["beta"]
    layers = params["layers"]
    for (w, b) in layers[:-1]:
        h = jnp.maximum(h @ w.T + b, 0.0)
    w, b = layers[-1]
    return jax.nn.sigmoid(h @ w.T + b).reshape(-1)


if __name__ == "__main__":
    dims = [16, 32, 32, 32, 1]   # config.model.dims
    key = jax.random.PRNGKey(0)
    kx1, kx2, kp = jax.random.split(key, 3)
    params = init_params(kp, dims)

    # bf16 MXU operands (f32 accumulation) -> compare to the f32 reference at a relaxed tol.
    TOL = dict(atol=1e-2, rtol=1e-2)

    # 1) Small batch: single full-array tile.
    x1 = jax.random.normal(kx1, (8, dims[0]), dtype=jnp.float32)
    y1 = qednet_forward(x1, params)
    jax.block_until_ready(y1)
    assert y1.shape == (8 * dims[-1],), y1.shape
    assert jnp.allclose(y1, ref_forward(x1, params), **TOL)

    # 2) Ragged batch, default tile (block larger than the array; OOB cols discarded).
    x2 = jax.random.normal(kx2, (300, dims[0]), dtype=jnp.float32)
    y2 = qednet_forward(x2, params)
    jax.block_until_ready(y2)
    assert y2.shape == (300 * dims[-1],), y2.shape
    assert jnp.allclose(y2, ref_forward(x2, params), **TOL)

    # 3) Multi-step grid with a ragged last tile (forced tile_b=128 -> 3 grid steps).
    y3 = qednet_forward(x2, params, tile_b=128)
    jax.block_until_ready(y3)
    assert y3.shape == (300 * dims[-1],), y3.shape
    assert jnp.allclose(y3, ref_forward(x2, params), **TOL)

    print("KERNEL_OK")
</pallas_src>

<mosaic_0001>
module attributes {stable_mosaic.version = 11 : i64} {
  func.func @qednet_kernel(%arg0: i32, %arg1: memref<8x16xf32, #tpu.memory_space<vmem>>, %arg2: memref<32x16xbf16, #tpu.memory_space<vmem>>, %arg3: memref<32x1xf32, #tpu.memory_space<vmem>>, %arg4: memref<2x32x32xbf16, #tpu.memory_space<vmem>>, %arg5: memref<2x32x1xf32, #tpu.memory_space<vmem>>, %arg6: memref<32x1xf32, #tpu.memory_space<vmem>>, %arg7: memref<1x1xf32, #tpu.memory_space<vmem>>, %arg8: memref<1x8xf32, #tpu.memory_space<vmem>>) attributes {dimension_semantics = [#tpu.dimension_semantics<parallel>], iteration_bounds = array<i64: 1>, scalar_prefetch = 0 : i64, scratch_operands = 0 : i64, tpu.core_type = #tpu.core_type<tc>, window_params = [{transform_indices = @transform_0, window_bounds = array<i64: 8, 16>}, {pipeline_mode = #tpu.pipeline_mode<synchronous>, transform_indices = @transform_1, window_bounds = array<i64: 32, 16>}, {pipeline_mode = #tpu.pipeline_mode<synchronous>, transform_indices = @transform_2, window_bounds = array<i64: 32, 1>}, {pipeline_mode = #tpu.pipeline_mode<synchronous>, transform_indices = @transform_3, window_bounds = array<i64: 2, 32, 32>}, {pipeline_mode = #tpu.pipeline_mode<synchronous>, transform_indices = @transform_4, window_bounds = array<i64: 2, 32, 1>}, {pipeline_mode = #tpu.pipeline_mode<synchronous>, transform_indices = @transform_5, window_bounds = array<i64: 32, 1>}, {pipeline_mode = #tpu.pipeline_mode<synchronous>, transform_indices = @transform_6, window_bounds = array<i64: 1, 1>}, {transform_indices = @transform_7, window_bounds = array<i64: 1, 8>}]} {
    %c0 = arith.constant 0 : index
    %c0_0 = arith.constant 0 : index
    %0 = vector.load %arg1[%c0, %c0_0] : memref<8x16xf32, #tpu.memory_space<vmem>>, vector<8x16xf32>
    %1 = arith.truncf %0 : vector<8x16xf32> to vector<8x16xbf16>
    %c0_1 = arith.constant 0 : index
    %c0_2 = arith.constant 0 : index
    %2 = vector.load %arg2[%c0_1, %c0_2] : memref<32x16xbf16, #tpu.memory_space<vmem>>, vector<32x16xbf16>
    %cst = arith.constant dense<0.000000e+00> : vector<32x8xf32>
    %3 = tpu.matmul %2, %1, %cst {dimension_numbers = #tpu.dot_dimension_numbers<[1], [1], [0], [0], [0, 0, 1, 0], [], []>} : vector<32x16xbf16>, vector<8x16xbf16>, vector<32x8xf32> -> vector<32x8xf32>
    %c0_3 = arith.constant 0 : index
    %c0_4 = arith.constant 0 : index
    %4 = vector.load %arg3[%c0_3, %c0_4] : memref<32x1xf32, #tpu.memory_space<vmem>>, vector<32x1xf32>
    %5 = vector.broadcast %4 : vector<32x1xf32> to vector<32x8xf32>
    %6 = arith.addf %3, %5 : vector<32x8xf32>
    %cst_5 = arith.constant 0.000000e+00 : f32
    %7 = vector.broadcast %cst_5 : f32 to vector<32x8xf32>
    %8 = arith.maximumf %6, %7 : vector<32x8xf32>
    %c0_6 = arith.constant 0 : index
    %c0_7 = arith.constant 0 : index
    %c0_8 = arith.constant 0 : index
    %9 = vector.load %arg4[%c0_6, %c0_7, %c0_8] : memref<2x32x32xbf16, #tpu.memory_space<vmem>>, vector<1x32x32xbf16>
    %10 = vector.shape_cast %9 : vector<1x32x32xbf16> to vector<32x32xbf16>
    %11 = arith.truncf %8 : vector<32x8xf32> to vector<32x8xbf16>
    %cst_9 = arith.constant dense<0.000000e+00> : vector<32x8xf32>
    %12 = tpu.matmul %10, %11, %cst_9 {dimension_numbers = #tpu.dot_dimension_numbers<[1], [0], [0], [1], [0, 0, 1, 1], [], []>} : vector<32x32xbf16>, vector<32x8xbf16>, vector<32x8xf32> -> vector<32x8xf32>
    %c0_10 = arith.constant 0 : index
    %c0_11 = arith.constant 0 : index
    %c0_12 = arith.constant 0 : index
    %13 = vector.load %arg5[%c0_10, %c0_11, %c0_12] : memref<2x32x1xf32, #tpu.memory_space<vmem>>, vector<1x32x1xf32>
    %14 = vector.shape_cast %13 : vector<1x32x1xf32> to vector<32x1xf32>
    %15 = vector.broadcast %14 : vector<32x1xf32> to vector<32x8xf32>
    %16 = arith.addf %12, %15 : vector<32x8xf32>
    %cst_13 = arith.constant 0.000000e+00 : f32
    %17 = vector.broadcast %cst_13 : f32 to vector<32x8xf32>
    %18 = arith.maximumf %16, %17 : vector<32x8xf32>
    %c1 = arith.constant 1 : index
    %c0_14 = arith.constant 0 : index
    %c0_15 = arith.constant 0 : index
    %19 = vector.load %arg4[%c1, %c0_14, %c0_15] : memref<2x32x32xbf16, #tpu.memory_space<vmem>>, vector<1x32x32xbf16>
    %20 = vector.shape_cast %19 : vector<1x32x32xbf16> to vector<32x32xbf16>
    %21 = arith.truncf %18 : vector<32x8xf32> to vector<32x8xbf16>
    %cst_16 = arith.constant dense<0.000000e+00> : vector<32x8xf32>
    %22 = tpu.matmul %20, %21, %cst_16 {dimension_numbers = #tpu.dot_dimension_numbers<[1], [0], [0], [1], [0, 0, 1, 1], [], []>} : vector<32x32xbf16>, vector<32x8xbf16>, vector<32x8xf32> -> vector<32x8xf32>
    %c1_17 = arith.constant 1 : index
    %c0_18 = arith.constant 0 : index
    %c0_19 = arith.constant 0 : index
    %23 = vector.load %arg5[%c1_17, %c0_18, %c0_19] : memref<2x32x1xf32, #tpu.memory_space<vmem>>, vector<1x32x1xf32>
    %24 = vector.shape_cast %23 : vector<1x32x1xf32> to vector<32x1xf32>
    %25 = vector.broadcast %24 : vector<32x1xf32> to vector<32x8xf32>
    %26 = arith.addf %22, %25 : vector<32x8xf32>
    %cst_20 = arith.constant 0.000000e+00 : f32
    %27 = vector.broadcast %cst_20 : f32 to vector<32x8xf32>
    %28 = arith.maximumf %26, %27 : vector<32x8xf32>
    %c0_21 = arith.constant 0 : index
    %c0_22 = arith.constant 0 : index
    %29 = vector.load %arg6[%c0_21, %c0_22] : memref<32x1xf32, #tpu.memory_space<vmem>>, vector<32x1xf32>
    %30 = vector.broadcast %29 : vector<32x1xf32> to vector<32x8xf32>
    %31 = arith.mulf %30, %28 : vector<32x8xf32>
    %cst_23 = arith.constant dense<0.000000e+00> : vector<8xf32>
    %32 = vector.multi_reduction <add>, %31, %cst_23 [0] : vector<32x8xf32> to vector<8xf32>
    %33 = vector.shape_cast %32 : vector<8xf32> to vector<1x8xf32>
    %c0_24 = arith.constant 0 : index
    %c0_25 = arith.constant 0 : index
    %34 = vector.load %arg7[%c0_24, %c0_25] : memref<1x1xf32, #tpu.memory_space<vmem>>, vector<1x1xf32>
    %35 = vector.broadcast %34 : vector<1x1xf32> to vector<1x8xf32>
    %36 = arith.addf %33, %35 : vector<1x8xf32>
    %37 = arith.negf %36 : vector<1x8xf32>
    %38 = math.exp %37 : vector<1x8xf32>
    %cst_26 = arith.constant 1.000000e+00 : f32
    %39 = vector.broadcast %cst_26 : f32 to vector<1x8xf32>
    %40 = arith.addf %39, %38 : vector<1x8xf32>
    %41 = arith.divf %39, %40 : vector<1x8xf32>
    %c0_27 = arith.constant 0 : index
    %c0_28 = arith.constant 0 : index
    %42 = vector.load %arg8[%c0_27, %c0_28] : memref<1x8xf32, #tpu.memory_space<vmem>>, vector<1x8xf32>
    tpu.vector_store %arg8[%c0_27, %c0_28], %41 {strides = array<i32>} : memref<1x8xf32, #tpu.memory_space<vmem>>, vector<1x8xf32>,
    return
  }
  func.func @transform_0(%arg0: i32) -> (i32, i32) {
    %c0_i32 = arith.constant 0 : i32
    %c0_i32_0 = arith.constant 0 : i32
    return %arg0, %c0_i32 : i32, i32
  }
  func.func @transform_1(%arg0: i32) -> (i32, i32) {
    %c0_i32 = arith.constant 0 : i32
    %c0_i32_0 = arith.constant 0 : i32
    %c0_i32_1 = arith.constant 0 : i32
    return %c0_i32, %c0_i32_0 : i32, i32
  }
  func.func @transform_2(%arg0: i32) -> (i32, i32) {
    %c0_i32 = arith.constant 0 : i32
    %c0_i32_0 = arith.constant 0 : i32
    %c0_i32_1 = arith.constant 0 : i32
    return %c0_i32, %c0_i32_0 : i32, i32
  }
  func.func @transform_3(%arg0: i32) -> (i32, i32, i32) {
    %c0_i32 = arith.constant 0 : i32
    %c0_i32_0 = arith.constant 0 : i32
    %c0_i32_1 = arith.constant 0 : i32
    %c0_i32_2 = arith.constant 0 : i32
    return %c0_i32, %c0_i32_0, %c0_i32_1 : i32, i32, i32
  }
  func.func @transform_4(%arg0: i32) -> (i32, i32, i32) {
    %c0_i32 = arith.constant 0 : i32
    %c0_i32_0 = arith.constant 0 : i32
    %c0_i32_1 = arith.constant 0 : i32
    %c0_i32_2 = arith.constant 0 : i32
    return %c0_i32, %c0_i32_0, %c0_i32_1 : i32, i32, i32
  }
  func.func @transform_5(%arg0: i32) -> (i32, i32) {
    %c0_i32 = arith.constant 0 : i32
    %c0_i32_0 = arith.constant 0 : i32
    %c0_i32_1 = arith.constant 0 : i32
    return %c0_i32, %c0_i32_0 : i32, i32
  }
  func.func @transform_6(%arg0: i32) -> (i32, i32) {
    %c0_i32 = arith.constant 0 : i32
    %c0_i32_0 = arith.constant 0 : i32
    %c0_i32_1 = arith.constant 0 : i32
    return %c0_i32, %c0_i32_0 : i32, i32
  }
  func.func @transform_7(%arg0: i32) -> (i32, i32) {
    %c0_i32 = arith.constant 0 : i32
    %c0_i32_0 = arith.constant 0 : i32
    return %c0_i32, %arg0 : i32, i32
  }
}

</mosaic_0001>

<bundles_post_ra>
// kernel: tpu_custom_call.1
= control target key start
LH: loop header
LB: loop body
LE: loop exit
PB: predicated region body
PF: predicated region fallthrough
CT: control target
= control target key end

     0   :  { %s536_s0 = inlined_call_operand.vmem [shape: f32[8,16], index: 0, kind: input, shape index: {}]   ;;  %s537_s1 = inlined_call_operand.vmem [shape: bf16[32,16], index: 1, kind: input, shape index: {}]   ;;  %s538_s2 = inlined_call_operand.vmem [shape: f32[32,1], index: 2, kind: input, shape index: {}]   ;;  %s539_s3 = inlined_call_operand.vmem [shape: bf16[2,32,32], index: 3, kind: input, shape index: {}]   ;;  %s540_s4 = inlined_call_operand.vmem [shape: f32[2,32,1], index: 4, kind: input, shape index: {}]   ;;  %s541_s5 = inlined_call_operand.vmem [shape: f32[32,1], index: 5, kind: input, shape index: {}]   ;;  %s542_s6 = inlined_call_operand.<no memory space> [shape: f32[1,1], index: 6, kind: input, shape index: {}]   ;;  %s543_s7 = inlined_call_operand.hbm [shape: f32[1,8], index: 7, kind: output, shape index: {}]  }
   0x1   :  { %v12_v0 = vstv %s542_s6 }
   0x2   :  { %13 = vst [vmem:[#allocation2] sm:$0x1] %v12_v0 }
   0x3   :  { %v38_v1 = vld [vmem:[%s538_s2 + $0x10] sm:$0xff]  ;;  %v36_v2 = vld [vmem:[%s538_s2] sm:$0xff]  ;;  %vm70_vm0 = vcmask 130048   ;;  %v412_v4 = vmov 0  }
   0x4   :  { %v30_v3 = vld [vmem:[%s536_s0] sm:$0xff]  ;;  %380 = vset.pattern.permute.xlu1 %v412_v4  ;;  %379 = vset.pattern.permute.xlu0 %v412_v4 }
   0x5   :  { %v31_v5 = vpack.c.bf16 %v30_v3, %v30_v3  ;;  %52 = vperm.xlu0 %379, %v38_v1   ;;  %42 = vperm.xlu1 %380, %v36_v2  }
   0x6   :  { %381 = vset.pattern.permute.xlu2 %v412_v4 }
   0x7   :  { %v78_v6 = vsel %vm70_vm0, %v31_v5, 0 }
   0x8   :  { %376 = vmatpush.bf16.xpose.msra.mxu3 %v78_v6  ;;  %87 = vmatpush.bf16.xpose.msra.mxu0 %v78_v6 }
   0x9   :  { %14 = vsyncpa [#allocation4], 0  ;;  %v39_v7 = vld [vmem:[%s538_s2 + $0x18] sm:$0xff]  ;;  %v37_v8 = vld [vmem:[%s538_s2 + $0x8] sm:$0xff]  ;;  %vm143_vm1 = vcmask 261120   ;;  %vm272_vm2 = vcmask 64512  }
   0xa   :  { %v371_v9 = vld [vmem:[%s537_s1 + $0x8] sm:$0xff]  ;;  %v370_v10 = vld [vmem:[%s537_s1] sm:$0xff]  ;;  %v357_v14 = vld [vmem:[%s540_s4 + $0x30] sm:$0xff]  ;;  %s322_s1 = sshll.u32 %s543_s7, 4  ;;  %vm313_vm6 = vcmask 57344   ;;  %s323_s1 = int_to_ptr.hbm [resolvable:$true] %s322_s1 }
   0xb   :  { %v109_v11 = vld [vmem:[%s540_s4] sm:$0xff]  ;;  %v110_v12 = vld [vmem:[%s540_s4 + $0x8] sm:$0xff]  ;;  %v247_v17 = vld [vmem:[%s541_s5 + $0x18] sm:$0xff] }
   0xc   :  { %v356_v13 = vld [vmem:[%s540_s4 + $0x28] sm:$0xff]  ;;  %v244_v15 = vld [vmem:[%s541_s5] sm:$0xff]  ;;  %v111_v24 = vld [vmem:[%s540_s4 + $0x10] sm:$0xff] }
   0xd   :  { %57 = vperm.xlu0 %379, %v39_v7   ;;  %47 = vperm.xlu1 %380, %v37_v8   ;;  %v245_v16 = vld [vmem:[%s541_s5 + $0x8] sm:$0xff]  ;;  %v286_v18 = vld [vmem:[#allocation2] sm:$0x1]  ;;  %v112_v34 = vld [vmem:[%s540_s4 + $0x18] sm:$0xff] }
   0xe   :  { %125 = vperm.xlu2 %381, %v111_v24   ;;  %v372_v39 = vld [vmem:[%s539_s3] sm:$0xff]  ;;  %v358_v41 = vld [vmem:[%s540_s4 + $0x38] sm:$0xff]  ;;  %v373_v42 = vld [vmem:[%s539_s3 + $0x8] sm:$0xff] }
   0xf   :  { %340 = vmatmul.msk.bf16.vlgmr.msra.gmra.mxu3 %vm70_vm0, %v371_v9  ;;  %339 = vmatmul.msk.bf16.vlgmr.msra.gmra.mxu0 %vm70_vm0, %v370_v10  ;;  %v355_v40 = vld [vmem:[%s540_s4 + $0x20] sm:$0xff]  ;;  %v246_v43 = vld [vmem:[%s541_s5 + $0x10] sm:$0xff]  ;;  %v375_v63 = vld [vmem:[%s539_s3 + $0x18] sm:$0xff] }
  0x10   :  { %v374_v62 = vld [vmem:[%s539_s3 + $0x10] sm:$0xff]  ;;  %s413_s3 = smov [#allocation3]  }
  0x11   :  { %s320_s2 = sshll.u32 %s413_s3, 4  ;;  %s321_s2 = int_to_ptr.vmem [resolvable:$true] %s320_s2 }
  0x15   :  { %115 = vperm.xlu0 %379, %v109_v11   ;;  %120 = vperm.xlu1 %380, %v110_v12  }
  0x16   :  { %130 = vperm.xlu2 %381, %v112_v34  }
  0x1d   :  { %192 = vperm.xlu0 %379, %v356_v13   ;;  %197 = vperm.xlu1 %380, %v357_v14  }
  0x1e   :  { %187 = vperm.xlu2 %381, %v355_v40  }
  0x25   :  { %250 = vperm.xlu0 %379, %v244_v15   ;;  %255 = vperm.xlu1 %380, %v245_v16  }
  0x26   :  { %202 = vperm.xlu2 %381, %v358_v41  }
  0x2d   :  { %265 = vperm.xlu0 %379, %v247_v17   ;;  %289 = vperm.xlu1 %380, %v286_v18  }
  0x2e   :  { %260 = vperm.xlu2 %381, %v246_v43  }
  0x68   :  { %v126_v46 = vpop.permute.xlu2 %125 }
  0x70   :  { %v131_v50 = vpop.permute.xlu2 %130 }
  0x77   :  { %v53_v20 = vpop.permute.xlu0 %52  ;;  %v43_v21 = vpop.permute.xlu1 %42 }
  0x78   :  { %v188_v1 = vpop.permute.xlu2 %187 }
  0x7f   :  { %v58_v25 = vpop.permute.xlu0 %57  ;;  %v48_v27 = vpop.permute.xlu1 %47 }
  0x80   :  { %v203_v5 = vpop.permute.xlu2 %202 }
  0x87   :  { %v121_v48 = vpop.permute.xlu1 %120  ;;  %v116_v54 = vpop.permute.xlu0 %115 }
  0x88   :  { %v261_v16 = vpop.permute.xlu2 %260 }
  0x8c   :  { %v89_v19 = vpop.f32.mrf.mxu0 }
  0x8d   :  { %v90_v29 = vadd.f32 %v89_v19, %v43_v21 }
  0x8f   :  { %v99_v35 = vmax.f32 %v90_v29, 0.0  ;;  %v193_v2 = vpop.permute.xlu0 %192  ;;  %v198_v4 = vpop.permute.xlu1 %197 }
  0x92   :  { %v94_v22 = vpop.f32.mrf.mxu3 }
  0x93   :  { %v95_v26 = vadd.f32 %v94_v22, %v53_v20 }
  0x94   :  { %v91_v23 = vpop.f32.mrf.mxu0 }
  0x95   :  { %v92_v30 = vadd.f32 %v91_v23, %v48_v27  ;;  %v101_v32 = vmax.f32 %v95_v26, 0.0 }
  0x97   :  { %v100_v36 = vmax.f32 %v92_v30, 0.0  ;;  %v251_v11 = vpop.permute.xlu0 %250  ;;  %v256_v14 = vpop.permute.xlu1 %255 }
  0x99   :  { %v107_v38 = vpack.c.bf16 %v100_v36, %v99_v35 }
  0x9a   :  { %v96_v28 = vpop.f32.mrf.mxu3 }
  0x9b   :  { %v97_v31 = vadd.f32 %v96_v28, %v58_v25 }
  0x9d   :  { %v102_v33 = vmax.f32 %v97_v31, 0.0 }
  0x9f   :  { %v108_v37 = vpack.c.bf16 %v102_v33, %v101_v32  ;;  %v266_v25 = vpop.permute.xlu0 %265  ;;  %v290_v35 = vpop.permute.xlu1 %289 }
  0xa1   :  { %156 = vmatpush.bf16.msra.mxu1 %v108_v37  ;;  %v292_v37 = vperm.slane %v290_v35, 0 }
  0xa5   :  { %157 = vmatpush.bf16.msra.mxu1 %v107_v38 }
  0xa8   :  { %349 = vmatmul.msk.bf16.vlgmr.msra.gmra.mxu1 %vm143_vm1, %v372_v39 }
  0xb8   :  { %350 = vmatmul.msk.bf16.gmra.mxu1 %vm143_vm1, %v373_v42 }
 0x125   :  { %v159_v44 = vpop.f32.mrf.mxu1 }
 0x126   :  { %v160_v55 = vadd.f32 %v159_v44, %v116_v54 }
 0x128   :  { %v169_v60 = vmax.f32 %v160_v55, 0.0 }
 0x12d   :  { %v161_v45 = vpop.f32.mrf.mxu1 }
 0x12e   :  { %v162_v52 = vadd.f32 %v161_v45, %v121_v48 }
 0x130   :  { %v170_v58 = vmax.f32 %v162_v52, 0.0 }
 0x132   :  { %v178_v61 = vpack.c.bf16 %v170_v58, %v169_v60 }
 0x135   :  { %v164_v47 = vpop.f32.mrf.mxu1 }
 0x136   :  { %v165_v49 = vadd.f32 %v164_v47, %v126_v46 }
 0x138   :  { %v171_v56 = vmax.f32 %v165_v49, 0.0 }
 0x13d   :  { %v166_v51 = vpop.f32.mrf.mxu1 }
 0x13e   :  { %v167_v53 = vadd.f32 %v166_v51, %v131_v50 }
 0x140   :  { %v172_v57 = vmax.f32 %v167_v53, 0.0 }
 0x142   :  { %v179_v59 = vpack.c.bf16 %v172_v57, %v171_v56 }
 0x144   :  { %227 = vmatpush.bf16.msra.mxu2 %v179_v59 }
 0x148   :  { %228 = vmatpush.bf16.msra.mxu2 %v178_v61 }
 0x14b   :  { %367 = vmatmul.msk.bf16.vlgmr.msra.gmra.mxu2 %vm143_vm1, %v374_v62 }
 0x15b   :  { %368 = vmatmul.msk.bf16.gmra.mxu2 %vm143_vm1, %v375_v63 }
 0x1ce   :  { %v230_v0 = vpop.f32.mrf.mxu2 }
 0x1cf   :  { %v231_v7 = vadd.f32 %v230_v0, %v188_v1 }
 0x1d1   :  { %v240_v12 = vmax.f32 %v231_v7, 0.0 }
 0x1d3   :  { %v268_v17 = vmul.f32 %v251_v11, %v240_v12 }
 0x1d5   :  { %v273_v22 = vsel %vm272_vm2, %v268_v17, 0.0 }
 0x1d6   :  { %v232_v3 = vpop.f32.mrf.mxu2 }
 0x1d7   :  { %v233_v6 = vadd.f32 %v232_v3, %v193_v2 }
 0x1d9   :  { %v241_v9 = vmax.f32 %v233_v6, 0.0 }
 0x1db   :  { %v269_v15 = vmul.f32 %v256_v14, %v241_v9 }
 0x1dd   :  { %v274_v20 = vsel %vm272_vm2, %v269_v15, 0.0 }
 0x1de   :  { %v235_v8 = vpop.f32.mrf.mxu2  ;;  %v275_v26 = vadd.f32 %v274_v20, %v273_v22 }
 0x1df   :  { %v236_v10 = vadd.f32 %v235_v8, %v198_v4 }
 0x1e1   :  { %v242_v13 = vmax.f32 %v236_v10, 0.0 }
 0x1e3   :  { %v270_v18 = vmul.f32 %v261_v16, %v242_v13 }
 0x1e5   :  { %v276_v23 = vsel %vm272_vm2, %v270_v18, 0.0 }
 0x1e6   :  { %v237_v19 = vpop.f32.mrf.mxu2  ;;  %v277_v28 = vadd.f32 %v276_v23, %v275_v26 }
 0x1e7   :  { %v238_v21 = vadd.f32 %v237_v19, %v203_v5 }
 0x1e9   :  { %v243_v24 = vmax.f32 %v238_v21, 0.0 }
 0x1eb   :  { %v271_v27 = vmul.f32 %v266_v25, %v243_v24 }
 0x1ed   :  { %v278_v29 = vsel %vm272_vm2, %v271_v27, 0.0 }
 0x1ee   :  { %v279_v30 = vadd.f32 %v278_v29, %v277_v28 }
 0x1f0   :  { %v280_v31 = vrot.slane %v279_v30, 4 }
 0x1f2   :  { %v281_v32 = vadd.f32 %v280_v31, %v279_v30 }
 0x1f4   :  { %v282_v33 = vrot.slane %v281_v32, 2 }
 0x1f6   :  { %v283_v34 = vadd.f32 %v282_v33, %v281_v32 }
 0x1f8   :  { %v284_v36 = vrot.slane %v283_v34, 1 }
 0x1fa   :  { %v285_v38 = vadd.f32 %v284_v36, %v283_v34 }
 0x1fc   :  { %v293_v39 = vadd.f32 %v292_v37, %v285_v38 }
 0x1fe   :  { %v369_v40 = vmul.f32 -1.442695, %v293_v39 }
 0x200   :  { %382 = vpow2.f32 %v369_v40 }
 0x206   :  { %v383_v41 = vpop.eup %382 }
 0x207   :  { %v297_v42 = vadd.f32 1.0, %v383_v41 }
 0x209   :  { %384 = vrcp.f32 %v297_v42  ;;  %v309_v46 = vand.u32 2147483648, %v297_v42  ;;  %v307_v48 = vand.u32 2147483647, %v297_v42  ;;  %vm303_vm4 = vweird.f32 %v297_v42 }
 0x20b   :  { %v310_v50 = vor.u32 1.1754944e-38, %v309_v46  ;;  %vm308_vm7 = vcmp.eq.f32.partialorder %v307_v48, 8.507059e+37 }
 0x20f   :  { %v385_v43 = vpop.eup %384 }
 0x210   :  { %v299_v44 = vmul.f32 %v385_v43, %v297_v42  ;;  %vm304_vm3 = vweird.f32 %v385_v43 }
 0x211   :  { %vm305_vm5 = vmor %vm303_vm4, %vm304_vm3 }
 0x212   :  { %v300_v45 = vsub.f32 1.0, %v299_v44 }
 0x214   :  { %v301_v47 = vmul.f32 %v385_v43, %v300_v45 }
 0x216   :  { %v302_v49 = vadd.f32 %v385_v43, %v301_v47 }
 0x218   :  { %v306_v51 = vsel %vm305_vm5, %v385_v43, %v302_v49 }
 0x219   :  { %v311_v52 = vsel %vm308_vm7, %v310_v50, %v306_v51 }
 0x21a   :  { %314 = vst.msk [vmem:[#allocation3] sm:$0x1] %vm313_vm6, %v311_v52 }
 0x21b   :  { %325 = dma.vmem_to_hbm [thread:$0]  %s321_s2, 16, %s323_s1, [#allocation4]  }
 0x21c   :  { %410 = dma.done.wait [#allocation4], 16  }
 0x21d   :  { %411 = vsyncadd [#allocation4], 4294967280 }
 0x21e   :  { %330 = vsyncpa [#allocation4], 1 }

</bundles_post_ra>
